<compile_context>
chip_gen: v7x
topology: tpu7x:2x2x1
jax: 0.10.0
libtpu: 0.0.40
codegen_flags: <defaults>
</compile_context>

<pallas_src>
import functools
import math

import jax
import jax.numpy as jnp
from jax import lax
from jax.experimental import pallas as pl
from jax.experimental.pallas import tpu as pltpu


def _round_up(x, m):
    return ((x + m - 1) // m) * m


def _gaussian_smearing_kernel(d_ref, o_ref, *, start, width, k, log_scaling, g):
    # d_ref: (TILE_N, 1)  distances column (sublane axis)
    # o_ref: (TILE_N, G)  output tile (G is the full last dim -> masked vst)
    d = d_ref[...]
    # Centers generated in-kernel: c_j = start + width * j  (linspace).
    c = start + width * lax.broadcasted_iota(jnp.int32, (1, g), 1).astype(jnp.float32)
    # Folded math:  scaling * exp(-0.5*((d-c)/width)^2)
    #            == exp(log_scaling - z*z)  with  z = (d-c) * (1/width)/sqrt(2)
    z = (d - c) * k                                   # broadcast -> (TILE_N, G)
    o_ref[...] = jnp.exp(log_scaling - z * z).astype(o_ref.dtype)


def gaussian_smearing(distances, start=0.0, stop=5.0, num_gaussians=100,
                      tile_n=None, out_dtype=jnp.float32):
    """Expand distances into Gaussian basis functions with a Pallas kernel."""
    if start >= stop:
        raise ValueError("Start value must be less than stop value.")
    if num_gaussians <= 0:
        raise ValueError("num_gaussians must be a positive integer.")

    distances = jnp.asarray(distances, dtype=jnp.float32)
    # Mirror the PyTorch ndim handling.
    if distances.ndim == 0:
        distances = distances[None]
    if distances.ndim == 1:
        distances = distances[:, None]
    if distances.ndim > 2:
        raise ValueError(
            f"Expected distances to have at most 2 dimensions, got {distances.ndim}")
    if distances.shape[-1] != 1:
        # TODO(synk): general 2-D inputs (last dim == num_gaussians, pure
        # elementwise broadcast) are not routed through this kernel.
        raise ValueError("Kernel implements the canonical (N, 1) distance layout.")

    g = int(num_gaussians)
    n = int(distances.shape[0])

    # Deterministic module "parameters", baked as plain Python floats.
    width = (stop - start) / (g - 1) if g > 1 else 1.0   # matches PyTorch g==1 case
    k = (1.0 / width) * math.sqrt(0.5)                   # inv_width / sqrt(2)
    log_scaling = -0.5 * math.log(2.0 * math.pi)         # ln(1/sqrt(2*pi))

    # Adaptive N tile:
    #   * cap 8192 rows -> ~3.3 MiB output block at G=100 (6.6 MiB double-
    #     buffered), safe under v5e's 16 MiB scoped-VMEM default and far under
    #     v6e/v7x's 32 MiB.
    #   * keep >= ~4 grid steps for large N so the "parallel" axis shards
    #     across v7x's two TensorCores.
    if tile_n is None:
        tile_n = min(8192, max(8, _round_up(pl.cdiv(max(n, 1), 4), 8)))
    else:
        tile_n = _round_up(max(int(tile_n), 8), 8)
    tile_n = min(tile_n, _round_up(max(n, 1), 8))

    grid_n = pl.cdiv(max(n, 1), tile_n)

    kernel = functools.partial(
        _gaussian_smearing_kernel,
        start=float(start), width=float(width),
        k=float(k), log_scaling=float(log_scaling), g=g)

    cost = pl.CostEstimate(
        flops=4 * n * g,
        transcendentals=n * g,
        bytes_accessed=4 * n + n * g * jnp.dtype(out_dtype).itemsize,
    )

    out = pl.pallas_call(
        kernel,
        out_shape=jax.ShapeDtypeStruct((n, g), out_dtype),
        grid_spec=pltpu.PrefetchScalarGridSpec(
            num_scalar_prefetch=0,
            grid=(grid_n,),
            in_specs=[pl.BlockSpec((tile_n, 1), lambda i: (i, 0))],
            # Full-extent last dim (G) -> exact (N, G) output, no wrapper slice.
            out_specs=pl.BlockSpec((tile_n, g), lambda i: (i, 0)),
        ),
        compiler_params=pltpu.CompilerParams(
            dimension_semantics=("parallel",)),
        cost_estimate=cost,
    )(distances)

    return out


def _reference(distances, start, stop, num_gaussians):
    distances = jnp.asarray(distances, dtype=jnp.float32)
    if distances.ndim == 0:
        distances = distances[None]
    if distances.ndim == 1:
        distances = distances[:, None]
    centers = jnp.linspace(start, stop, num_gaussians, dtype=jnp.float32)
    width = (stop - start) / (num_gaussians - 1) if num_gaussians > 1 else 1.0
    scaling = 1.0 / math.sqrt(2.0 * math.pi)
    return scaling * jnp.exp(-0.5 * ((distances - centers[None, :]) / width) ** 2)


if __name__ == "__main__":
    key = jax.random.PRNGKey(0)

    # Small 1-D distance vector, consistent with the module's typical usage.
    n, num_gaussians = 16, 100
    distances = jax.random.uniform(key, (n,), dtype=jnp.float32,
                                   minval=0.0, maxval=5.0)

    out = gaussian_smearing(distances, start=0.0, stop=5.0,
                            num_gaussians=num_gaussians)
    out = jax.block_until_ready(out)

    ref = _reference(distances, 0.0, 5.0, num_gaussians)
    assert out.shape == (n, num_gaussians), out.shape
    # Tolerance slightly relaxed vs pure-f32-identity: in-kernel iota centers
    # and the ln(scaling) fold differ from jnp.linspace by a few f32 ULPs.
    assert jnp.allclose(out, ref, atol=2e-5, rtol=1e-5), "mismatch vs reference"

    # Exercise the multi-tile grid path, including a partial (masked) last block.
    key2 = jax.random.PRNGKey(1)
    n2 = 300
    distances2 = jax.random.uniform(key2, (n2,), dtype=jnp.float32,
                                    minval=0.0, maxval=5.0)
    out2 = jax.block_until_ready(
        gaussian_smearing(distances2, 0.0, 5.0, num_gaussians, tile_n=128))
    ref2 = _reference(distances2, 0.0, 5.0, num_gaussians)
    assert out2.shape == (n2, num_gaussians), out2.shape
    assert jnp.allclose(out2, ref2, atol=2e-5, rtol=1e-5), \
        "mismatch vs reference (multi-tile)"

    # Scalar-input path (mirrors PyTorch's unsqueeze handling).
    out3 = jax.block_until_ready(
        gaussian_smearing(jnp.float32(2.5), 0.0, 5.0, num_gaussians))
    ref3 = _reference(jnp.float32(2.5), 0.0, 5.0, num_gaussians)
    assert out3.shape == (1, num_gaussians), out3.shape
    assert jnp.allclose(out3, ref3, atol=2e-5, rtol=1e-5), "mismatch vs reference (scalar)"

    print("KERNEL_OK")
</pallas_src>

<mosaic_0001>
module attributes {stable_mosaic.version = 11 : i64} {
  func.func @_gaussian_smearing_kernel(%arg0: i32, %arg1: memref<8x1xf32, #tpu.memory_space<vmem>>, %arg2: memref<8x100xf32, #tpu.memory_space<vmem>>) attributes {dimension_semantics = [#tpu.dimension_semantics<parallel>], iteration_bounds = array<i64: 2>, scalar_prefetch = 0 : i64, scratch_operands = 0 : i64, tpu.core_type = #tpu.core_type<tc>, window_params = [{transform_indices = @transform_0, window_bounds = array<i64: 8, 1>}, {transform_indices = @transform_1, window_bounds = array<i64: 8, 100>}]} {
    %c0 = arith.constant 0 : index
    %c0_0 = arith.constant 0 : index
    %0 = vector.load %arg1[%c0, %c0_0] : memref<8x1xf32, #tpu.memory_space<vmem>>, vector<8x1xf32>
    %1 = tpu.iota {dimensions = array<i32: 1>} : vector<1x100xi32>
    %2 = arith.sitofp %1 : vector<1x100xi32> to vector<1x100xf32>
    %cst = arith.constant 0.0505050495 : f32
    %3 = vector.broadcast %cst : f32 to vector<1x100xf32>
    %4 = arith.mulf %3, %2 : vector<1x100xf32>
    %cst_1 = arith.constant 0.000000e+00 : f32
    %5 = vector.broadcast %cst_1 : f32 to vector<1x100xf32>
    %6 = arith.addf %5, %4 : vector<1x100xf32>
    %7 = vector.broadcast %0 : vector<8x1xf32> to vector<8x100xf32>
    %8 = vector.broadcast %6 : vector<1x100xf32> to vector<8x100xf32>
    %9 = arith.subf %7, %8 : vector<8x100xf32>
    %cst_2 = arith.constant 14.0007143 : f32
    %10 = vector.broadcast %cst_2 : f32 to vector<8x100xf32>
    %11 = arith.mulf %9, %10 : vector<8x100xf32>
    %12 = arith.mulf %11, %11 : vector<8x100xf32>
    %cst_3 = arith.constant -0.918938517 : f32
    %13 = vector.broadcast %cst_3 : f32 to vector<8x100xf32>
    %14 = arith.subf %13, %12 : vector<8x100xf32>
    %15 = math.exp %14 : vector<8x100xf32>
    %c0_4 = arith.constant 0 : index
    %c0_5 = arith.constant 0 : index
    %16 = vector.load %arg2[%c0_4, %c0_5] : memref<8x100xf32, #tpu.memory_space<vmem>>, vector<8x100xf32>
    tpu.vector_store %arg2[%c0_4, %c0_5], %15 {strides = array<i32>} : memref<8x100xf32, #tpu.memory_space<vmem>>, vector<8x100xf32>,
    return
  }
  func.func @transform_0(%arg0: i32) -> (i32, i32) {
    %c0_i32 = arith.constant 0 : i32
    %c0_i32_0 = arith.constant 0 : i32
    return %arg0, %c0_i32 : i32, i32
  }
  func.func @transform_1(%arg0: i32) -> (i32, i32) {
    %c0_i32 = arith.constant 0 : i32
    %c0_i32_0 = arith.constant 0 : i32
    return %arg0, %c0_i32 : i32, i32
  }
}

</mosaic_0001>

<bundles_post_ra>
// kernel: tpu_custom_call.1
= control target key start
LH: loop header
LB: loop body
LE: loop exit
PB: predicated region body
PF: predicated region fallthrough
CT: control target
= control target key end

     0   :  { %6 = vsyncpa [#allocation3], 0  ;;  %s433_s0 = inlined_call_operand.vmem [shape: f32[16,1], index: 0, kind: input, shape index: {}]   ;;  %s434_s1 = inlined_call_operand.hbm [shape: f32[16,100], index: 1, kind: output, shape index: {}]  }
   0x1   :  { %8 = vsyncpa [#allocation3 + $0x1], 0  ;;  %s333_s6 = smov 0   ;;  %s335_s7 = smov 0  }
   0x2   :  { %s337_s8 = smov 0   ;;  %s339_s9 = smov 0  }
   0x3 LB: > { %s354_s10 = sadd.s32 4294967295, %s319_s9   ;;  %s204_s11 = sadd.s32 4294967294, %s319_s9   ;;  %s319_s9 = sphi %s339_s9, %s440_s9   ;;  %s315_s8 = sphi %s337_s8, %s439_s8   ;;  %s311_s7 = sphi %s335_s7, %s438_s7   ;;  %s307_s6 = sphi %s333_s6, %s437_s6  }
   0x4   : > { %s358_s12 = sadd.s32 1, %s319_s9   ;;  %s47_s13 = sadd.s32 1, %s315_s8 }
   0x5   : > { %s44_s14 = ssub.s32 %s319_s9, %s358_s12  ;;  %p57_p0 = scmp.ne.s32.totalorder %s315_s8, %s311_s7 }
   0x6   : > { %p45_p1 = scmp.eq.s32.totalorder %s44_s14, 0  ;;  %p58_p2 = scmp.eq.s32.totalorder %s354_s10, 1 }
   0x7   : > { %p63_p3 = scmp.ne.s32.totalorder %s311_s7, %s307_s6  ;;  %p64_p4 = scmp.eq.s32.totalorder %s204_s11, 1 }
   0x8   : > { %s369_s15 = scalar_select %p45_p1, %s315_s8, %s47_s13  }
   0x9   : > { %p371_p5 = por %p58_p2, %p57_p0  ;;  %p375_p6 = por %p64_p4, %p63_p3 }
   0xa   : > { %p207_p7 = scmp.ge.s32.totalorder %s319_s9, 1  ;;  %p89_p8 = scmp.lt.s32.totalorder %s319_s9, 3 }
   0xc   : > { %p90_p9 = pnand %p207_p7, %p89_p8 }
   0xd   : > { %p108_p10 = scmp.lt.s32.totalorder (!%p90_p9), %s354_s10, 1  ;;  %v321_v0 = vmov (!%p90_p9), 0   ;;  %v113_v2 = vlaneseq (!%p90_p9)  ;;  %s105_s23 = sand.u32 (!%p90_p9), 1, %s311_s7   ;;  %vm129_vm0 = vcmask (!%p90_p9), 818176  }
   0xe   : > { %93 = sbr.rel (%p90_p9) target bundleno = 189 (0xbd), region = 24  ;;  %254 = vset.pattern.permute.xlu0 (!%p90_p9), %v321_v0  ;;  %s208_s24 = sshll.u32 (!%p90_p9), %s105_s23, 3 }
   0xf   : > { %v114_v3 = vand.u32 (!%p90_p9), 127, %v113_v2  ;;  %s211_s25 = sshll.u32 (!%p90_p9), %s354_s10, 7  ;;  %s107_s26 = scalar_lea.vmem (!%p90_p9), [#allocation2], %s208_s24 }
  0x10   : > { %s145_s27 = sshll.u32 (!%p90_p9), %s107_s26, 4  ;;  %s391_s30 = scalar_lea.hbm (!%p90_p9), %s434_s1, %s211_s25  ;;  %s393_s27 = int_to_ptr.vmem [resolvable:$true] %s145_s27 }
  0x11   : > { %v115_v4 = vcvt.s32.f32 (!%p90_p9), %v114_v3  ;;  %s132_s2 = scalar_lea.sflag (!%p90_p9), [#allocation3], %s105_s23  ;;  %s257_s3 = scalar_lea.vmem (!%p90_p9), %s393_s27, 128 }
  0x12   : > { %p258_p11 = scmp.ne.s32.totalorder (!%p90_p9), %s393_s27, %s257_s3  ;;  %s322_s4 = smov (!%p90_p9), [#allocation2]  }
  0x13   : > { %v116_v5 = vmul.f32 (!%p90_p9), 0.05050505, %v115_v4  ;;  %s261_s5 = sshll.u32 (!%p90_p9), %s322_s4, 4  ;;  %s262_s5 = int_to_ptr.vmem [resolvable:$false] %s261_s5 }
  0x14   : > { %p259_p12 = pnand (!%p90_p9), %p258_p11, %p371_p5  ;;  %p264_p0 = scmp.lt.s32.totalorder (!%p90_p9), %s393_s27, %s262_s5 }
  0x15   : > { %s109_s18 = scalar_select %p108_p10, %s354_s10, 1 }
  0x16   : > { %p260_p13 = pneg %p259_p12  ;;  %s263_s10 = scalar_lea.vmem %s262_s5, 256 }
  0x17   : > { %s209_s19 = sshll.u32 %s109_s18, 3  ;;  %p265_p1 = scmp.lt.s32.totalorder %s263_s10, %s257_s3 }
  0x18   : > { %s111_s22 = scalar_lea.vmem %s433_s0, %s209_s19 }
  0x19   : > { %v112_v1 = vld [vmem:[%s111_s22] sm:$0xff]  ;;  %p266_p2 = por %p265_p1, %p264_p0 }
  0x1a   : > { %120 = vperm.xlu0 %254, %v112_v1  }
  0x1b   : > { %p267_p3 = pnand %p266_p2, %p260_p13 }
  0x99   : > { %v121_v6 = vpop.permute.xlu0 %120 }
  0x9a   : > { %v123_v7 = vsub.f32 %v121_v6, %v116_v5 }
  0x9c   : > { %v124_v8 = vmul.f32 14.000714, %v123_v7 }
  0x9e   : > { %v125_v9 = vmul.f32 %v124_v8, %v124_v8 }
  0xa0   : > { %v126_v10 = vsub.f32 -0.9189385, %v125_v9 }
  0xa2   : > { %v127_v11 = vmul.f32 1.442695, %v126_v10 }
  0xa4   : > { %255 = vpow2.f32 %v127_v11 }
  0xae   : > { %v256_v12 = vpop.eup %255 }
  0xaf   : > { %130 = vst.msk [vmem:[%s107_s26] sm:$0xff] %vm129_vm0, %v256_v12 }
  0xb0   : > { %270 = shalt.err (!%p267_p3)
}
  0xb1   : > { %s271_s11 = scalar_lea.hbm %s391_s30, 128  ;;  %s275_s18 = scalar_lea.hbm %s434_s1, 256 }
  0xb2   : > { %p272_p4 = scmp.ne.s32.totalorder %s391_s30, %s271_s11  ;;  %p276_p9 = scmp.lt.u32.totalorder %s391_s30, %s434_s1 }
  0xb3   : > { %p277_p10 = scmp.lt.u32.totalorder %s275_s18, %s271_s11  ;;  %p279_p12 = scmp.lt.u32.totalorder %s271_s11, %s391_s30 }
  0xb4   : > { %p273_p7 = pnand %p272_p4, %p371_p5 }
  0xb5   : > { %p278_p11 = por %p277_p10, %p276_p9 }
  0xb6   : > { %p274_p8 = pneg %p273_p7 }
  0xb7   : > { %p280_p13 = por %p279_p12, %p278_p11 }
  0xb9   : > { %p281_p0 = pnand %p280_p13, %p274_p8 }
  0xbb   : > { %284 = shalt.err (!%p281_p0)
}
  0xbc   : > { %214 = dma.vmem_to_hbm [thread:$0]  (%p371_p5), %s393_s27, 128, %s391_s30, %s132_s2  }
  0xbd PF: > { %p220_p1 = scmp.ge.s32.totalorder %s319_s9, 2  ;;  %s157_s21 = sand.u32 1, %s307_s6  }
  0xbe   : > { %s158_s22 = scalar_lea.sflag [#allocation3], %s157_s21 }
  0xbf   : > { %p217_p2 = pnand %p220_p1, %p375_p6 }
  0xc1   : > { %302 = dma.done.wait (!%p217_p2), %s158_s22, 128  }
  0xc2   : > { %304 = vsyncadd (!%p217_p2), %s158_s22, 4294967168  ;;  %p11_p3 = scmp.ge.s32.totalorder %s358_s12, 4   ;;  %s437_s6 = smov %s311_s7 }
  0xc3   : > { %s438_s7 = smov %s315_s8  ;;  %s439_s8 = smov %s369_s15 }
  0xc4   : > { %s440_s9 = smov %s358_s12  ;;  %13 = sbr.rel (!%p11_p3) target bundleno = 3 (0x3), region = 59 }
  0xcb   :  { %163 = vsyncpa [#allocation3], 1 }
  0xcc   :  { %165 = vsyncpa [#allocation3 + $0x1], 1 }

</bundles_post_ra>
